<compile_context>
chip_gen: v5e
topology: v5e:2x2
jax: 0.10.0
libtpu: 0.0.40
codegen_flags: <defaults>
</compile_context>

<pallas_src>
import functools
import math

import jax
import jax.numpy as jnp
from jax.experimental import pallas as pl
from jax.experimental.pallas import tpu as pltpu


# ----------------------------- Pallas kernels -----------------------------

def _freqs_kernel(consts_ref, freqs_ref):
    """freqs = (base + row) * a + b, with a/b host-precomputed per lane."""
    tile_s = freqs_ref.shape[0]
    base = pl.program_id(0) * tile_s
    row = jax.lax.broadcasted_iota(jnp.int32, freqs_ref.shape, 0) + base
    r = row.astype(jnp.float32)
    freqs_ref[...] = r * consts_ref[0:1, :] + consts_ref[1:2, :]


def _freqs_xpos_kernel(consts_ref, freqs_ref, scale_ref):
    """Same as above plus xpos scale = exp((base + row) * slope + off)."""
    tile_s = freqs_ref.shape[0]
    base = pl.program_id(0) * tile_s
    row = jax.lax.broadcasted_iota(jnp.int32, freqs_ref.shape, 0) + base
    r = row.astype(jnp.float32)
    freqs_ref[...] = r * consts_ref[0:1, :] + consts_ref[1:2, :]
    scale_ref[...] = jnp.exp(r * consts_ref[2:3, :] + consts_ref[3:4, :])


# ------------------------------- Tiling ------------------------------------

_VMEM_BUDGET_BYTES = 24 * 1024 * 1024   # double-buffered outputs + temporaries
_VMEM_LIMIT_BYTES = 40 * 1024 * 1024    # explicit scoped-VMEM limit (< v7x 64 MiB)
_MAX_TILE_ROWS = 16384
_TEMP_FACTOR = 4                        # in-kernel temporaries, in output-block units


def _choose_tiling(rows, width, n_outputs):
    """Pick (tile_rows, grid) so each step writes multi-MiB, VMEM-safe blocks."""
    bytes_per_row = width * 4 * (2 * n_outputs + _TEMP_FACTOR)
    tile = (_VMEM_BUDGET_BYTES // bytes_per_row) // 8 * 8
    tile = max(8, min(tile, _MAX_TILE_ROWS))
    if rows <= tile:
        return rows, 1
    grid = -(-rows // tile)
    if grid % 2:  # balance the parallel axis across the 2 TensorCores on v7x
        alt_tile = max(8, ((-(-rows // (grid + 1)) + 7) // 8) * 8)
        alt_grid = -(-rows // alt_tile)
        if alt_grid % 2 == 0:
            tile, grid = alt_tile, alt_grid
    return tile, grid


# ------------------------------- Wrapper -----------------------------------

@functools.lru_cache(maxsize=None)
def _sinusoidal_embeddings(seq_len, dim, scale_base, use_xpos, theta):
    assert not (use_xpos and scale_base is None), \
        "scale base must be defined if using xpos"

    # Parameter buffers (as in __init__).
    idx = jnp.arange(0, dim, 2, dtype=jnp.float32)
    inv_freq = 1.0 / (theta ** (idx / dim))                 # (half,)
    half = inv_freq.shape[0]
    out_dim = 2 * half
    inv_freq_full = jnp.concatenate([inv_freq, inv_freq])   # (out_dim,)

    # Lane-dense packing: fold `pack` consecutive rows onto the lane axis so
    # width is always a multiple of 128 (full-width, unmasked stores).
    pack = 128 // math.gcd(out_dim, 128)
    rows = -(-seq_len // pack)
    rows = ((rows + 7) // 8) * 8            # sublane-aligned; sliced in wrapper
    seq_padded = rows * pack
    width = pack * out_dim

    # Host-folded per-lane constants: element (row r, lane l) with
    # g = l // out_dim corresponds to original t = r*pack + g, so
    #   freqs = t * inv_freq[l]            = r*a + b
    #   power = (t - seq_len//2)/scale_base
    #   scale = scale_j ** power           = exp(r*slope + off)
    grp = jnp.repeat(jnp.arange(pack, dtype=jnp.float32), out_dim)   # (width,)
    inv_freq_lane = jnp.tile(inv_freq_full, pack)                    # (width,)
    a = float(pack) * inv_freq_lane
    b = grp * inv_freq_lane
    consts_list = [a, b]

    if use_xpos:
        scale = (jnp.arange(0, dim, 2, dtype=jnp.float32) + 0.4 * dim) / (1.4 * dim)
        log_scale = jnp.log(scale)
        log_scale_lane = jnp.tile(jnp.concatenate([log_scale, log_scale]), pack)
        inv_sb = 1.0 / float(scale_base)
        half_seq = float(seq_len // 2)
        slope = (float(pack) * inv_sb) * log_scale_lane
        off = ((grp - half_seq) * inv_sb) * log_scale_lane
        consts_list += [slope, off]

    consts = jnp.stack(consts_list, axis=0).astype(jnp.float32)  # (n_consts, width)

    n_out = 2 if use_xpos else 1
    tile_s, grid_n = _choose_tiling(rows, width, n_out)

    consts_spec = pl.BlockSpec((consts.shape[0], width), lambda i: (0, 0))
    out_spec = pl.BlockSpec((tile_s, width), lambda i: (i, 0))
    cparams = pltpu.CompilerParams(
        dimension_semantics=("parallel",),
        vmem_limit_bytes=_VMEM_LIMIT_BYTES)

    if not use_xpos:
        freqs = pl.pallas_call(
            _freqs_kernel,
            grid=(grid_n,),
            in_specs=[consts_spec],
            out_specs=out_spec,
            out_shape=jax.ShapeDtypeStruct((rows, width), jnp.float32),
            compiler_params=cparams,
        )(consts)
        return (freqs.reshape(seq_padded, out_dim)[:seq_len],
                jnp.ones((1,), dtype=jnp.float32))

    freqs, scale_out = pl.pallas_call(
        _freqs_xpos_kernel,
        grid=(grid_n,),
        in_specs=[consts_spec],
        out_specs=(out_spec, out_spec),
        out_shape=(jax.ShapeDtypeStruct((rows, width), jnp.float32),
                   jax.ShapeDtypeStruct((rows, width), jnp.float32)),
        compiler_params=cparams,
    )(consts)
    return (freqs.reshape(seq_padded, out_dim)[:seq_len],
            scale_out.reshape(seq_padded, out_dim)[:seq_len])


def sinusoidal_embeddings(x, dim, scale_base=None, use_xpos=False, theta=10000):
    """JAX/Pallas re-implementation of SinusoidalEmbeddings.forward.

    Only x.shape[-2] (seq_len) is consumed, matching the PyTorch module.
    Returns (freqs, scale): freqs is (seq_len, dim) float32; scale is
    ones((1,)) when use_xpos=False else (seq_len, dim) float32.
    """
    # TODO(synk): for a >2x win the generation could be fused into the
    # rotary-apply kernel (or emit half-width/bf16) so freqs/scale never
    # round-trip HBM; kept separate here to preserve the module's contract.
    seq_len = int(x.shape[-2])
    return _sinusoidal_embeddings(seq_len, int(dim), scale_base,
                                  bool(use_xpos), theta)


# ----------------------------- Reference (JAX) ------------------------------

def _reference(x, dim, scale_base=None, use_xpos=False, theta=10000):
    seq_len = x.shape[-2]
    inv_freq = 1.0 / (theta ** (jnp.arange(0, dim, 2, dtype=jnp.float32) / dim))
    t = jnp.arange(seq_len, dtype=jnp.float32)
    freqs = jnp.einsum('i,j->ij', t, inv_freq)
    freqs = jnp.concatenate([freqs, freqs], axis=-1)
    if not use_xpos:
        return freqs, jnp.ones((1,), dtype=jnp.float32)
    scale = (jnp.arange(0, dim, 2, dtype=jnp.float32) + 0.4 * dim) / (1.4 * dim)
    power = (t - seq_len // 2) / scale_base
    s = scale ** power[:, None]
    s = jnp.concatenate([s, s], axis=-1)
    return freqs, s


# --------------------------------- Main -------------------------------------

if __name__ == "__main__":
    key = jax.random.PRNGKey(0)

    # Case 1: small, no xpos (lane-packed path, pack=4 -> 128-wide stores).
    batch, seq, dim = 2, 8, 32
    x = jax.random.normal(key, (batch, seq, dim), dtype=jnp.float32)
    freqs, ones = sinusoidal_embeddings(x, dim, use_xpos=False)
    jax.block_until_ready((freqs, ones))
    ref_freqs, ref_ones = _reference(x, dim, use_xpos=False)
    assert freqs.shape == (seq, dim), "freqs shape mismatch"
    assert jnp.allclose(freqs, ref_freqs, atol=1e-5), "freqs mismatch"
    assert jnp.allclose(ones, ref_ones), "ones mismatch"

    # Case 2: small, xpos.
    freqs_x, scale_x = sinusoidal_embeddings(x, dim, scale_base=512, use_xpos=True)
    jax.block_until_ready((freqs_x, scale_x))
    ref_freqs_x, ref_scale_x = _reference(x, dim, scale_base=512, use_xpos=True)
    assert freqs_x.shape == (seq, dim) and scale_x.shape == (seq, dim)
    assert jnp.allclose(freqs_x, ref_freqs_x, atol=1e-5), "xpos freqs mismatch"
    assert jnp.allclose(scale_x, ref_scale_x, atol=1e-5), "xpos scale mismatch"

    # Case 3: longer sequence, xpos (pack=2).
    seq2, dim2 = 1024, 64
    x2 = jax.random.normal(key, (1, seq2, dim2), dtype=jnp.float32)
    f2, s2 = sinusoidal_embeddings(x2, dim2, scale_base=512, use_xpos=True)
    jax.block_until_ready((f2, s2))
    rf2, rs2 = _reference(x2, dim2, scale_base=512, use_xpos=True)
    assert jnp.allclose(f2, rf2, atol=1e-5), "long-seq freqs mismatch"
    assert jnp.allclose(s2, rs2, atol=1e-5), "long-seq scale mismatch"

    # Case 4: seq not divisible by the pack factor (padding + slice path).
    seq3, dim3 = 1000, 32
    x3 = jax.random.normal(key, (1, seq3, dim3), dtype=jnp.float32)
    f3, s3 = sinusoidal_embeddings(x3, dim3, scale_base=512, use_xpos=True)
    jax.block_until_ready((f3, s3))
    rf3, rs3 = _reference(x3, dim3, scale_base=512, use_xpos=True)
    assert f3.shape == (seq3, dim3) and s3.shape == (seq3, dim3)
    assert jnp.allclose(f3, rf3, atol=1e-5), "padded-seq freqs mismatch"
    assert jnp.allclose(s3, rs3, atol=1e-5), "padded-seq scale mismatch"

    # Case 5: exercises grid > 1 (tiled parallel axis, partial tail block).
    seq4, dim4 = 20000, 64
    x4 = jax.random.normal(key, (1, seq4, dim4), dtype=jnp.float32)
    f4, s4 = sinusoidal_embeddings(x4, dim4, scale_base=4096, use_xpos=True)
    jax.block_until_ready((f4, s4))
    rf4, rs4 = _reference(x4, dim4, scale_base=4096, use_xpos=True)
    assert f4.shape == (seq4, dim4) and s4.shape == (seq4, dim4)
    assert jnp.allclose(f4, rf4, atol=1e-5), "tiled freqs mismatch"
    assert jnp.allclose(s4, rs4, atol=1e-5), "tiled scale mismatch"

    print("KERNEL_OK")
</pallas_src>

<mosaic_0001>
module attributes {stable_mosaic.version = 11 : i64} {
  func.func @_freqs_kernel(%arg0: i32, %arg1: memref<2x128xf32, #tpu.memory_space<vmem>>, %arg2: memref<8x128xf32, #tpu.memory_space<vmem>>) attributes {dimension_semantics = [#tpu.dimension_semantics<parallel>], iteration_bounds = array<i64: 1>, scalar_prefetch = 0 : i64, scratch_operands = 0 : i64, tpu.core_type = #tpu.core_type<tc>, window_params = [{pipeline_mode = #tpu.pipeline_mode<synchronous>, transform_indices = @transform_0, window_bounds = array<i64: 2, 128>}, {transform_indices = @transform_1, window_bounds = array<i64: 8, 128>}]} {
    %c8_i32 = arith.constant 8 : i32
    %0 = arith.muli %arg0, %c8_i32 : i32
    %1 = tpu.iota {dimensions = array<i32: 0>} : vector<8x128xi32>
    %2 = vector.broadcast %0 : i32 to vector<8x128xi32>
    %3 = arith.addi %1, %2 : vector<8x128xi32>
    %4 = arith.sitofp %3 : vector<8x128xi32> to vector<8x128xf32>
    %c0 = arith.constant 0 : index
    %c0_0 = arith.constant 0 : index
    %5 = vector.load %arg1[%c0, %c0_0] : memref<2x128xf32, #tpu.memory_space<vmem>>, vector<1x128xf32>
    %6 = vector.broadcast %5 : vector<1x128xf32> to vector<8x128xf32>
    %7 = arith.mulf %4, %6 : vector<8x128xf32>
    %c1 = arith.constant 1 : index
    %c0_1 = arith.constant 0 : index
    %8 = vector.load %arg1[%c1, %c0_1] : memref<2x128xf32, #tpu.memory_space<vmem>>, vector<1x128xf32>
    %9 = vector.broadcast %8 : vector<1x128xf32> to vector<8x128xf32>
    %10 = arith.addf %7, %9 : vector<8x128xf32>
    %c0_2 = arith.constant 0 : index
    %c0_3 = arith.constant 0 : index
    %11 = vector.load %arg2[%c0_2, %c0_3] : memref<8x128xf32, #tpu.memory_space<vmem>>, vector<8x128xf32>
    tpu.vector_store %arg2[%c0_2, %c0_3], %10 {strides = array<i32>} : memref<8x128xf32, #tpu.memory_space<vmem>>, vector<8x128xf32>,
    return
  }
  func.func @transform_0(%arg0: i32) -> (i32, i32) {
    %c0_i32 = arith.constant 0 : i32
    %c0_i32_0 = arith.constant 0 : i32
    %c0_i32_1 = arith.constant 0 : i32
    return %c0_i32, %c0_i32_0 : i32, i32
  }
  func.func @transform_1(%arg0: i32) -> (i32, i32) {
    %c0_i32 = arith.constant 0 : i32
    %c0_i32_0 = arith.constant 0 : i32
    return %arg0, %c0_i32 : i32, i32
  }
}

</mosaic_0001>

<bundles_post_ra>
// kernel: tpu_custom_call.1
= control target key start
LH: loop header
LB: loop body
LE: loop exit
PB: predicated region body
PF: predicated region fallthrough
CT: control target
= control target key end

     0   :  { %6 = vsyncpa [#allocation3], 0  ;;  %s127_s0 = inlined_call_operand.hbm [shape: f32[2,128], index: 0, kind: input, shape index: {}]   ;;  %s128_s1 = inlined_call_operand.hbm [shape: f32[8,128], index: 1, kind: output, shape index: {}]  }
   0x1   :  { %7 = vsyncpa [#allocation4], 0  ;;  %s13_s8 = sshll.u32 %s127_s0, 4  ;;  %s109_s9 = smov [#allocation2]   ;;  %s14_s8 = int_to_ptr.hbm [resolvable:$true] %s13_s8 }
   0x2   :  { %s15_s10 = sshll.u32 %s109_s9, 4  ;;  %s16_s10 = int_to_ptr.vmem [resolvable:$true] %s15_s10 }
   0x3   :  { %18 = dma.hbm_to_vmem [thread:$0]  %s14_s8, 32, %s16_s10, [#allocation3]  }
   0x4   :  { %105 = dma.done.wait [#allocation3], 32  }
   0x5   :  { %106 = vsyncadd [#allocation3], 4294967264  ;;  %v24_v0 = vlaneseq  ;;  %v55_v3 = vld [vmem:[#allocation2] ss:$0 sm:$0xff]  ;;  %v56_v4 = vld [vmem:[#allocation2 + $0x1] ss:$0 sm:$0xff] }
   0x6   :  { %s110_s11 = smov [#allocation5]   ;;  %s43_s15 = sshll.u32 %s128_s1, 4  ;;  %s44_s15 = int_to_ptr.hbm [resolvable:$true] %s43_s15 }
   0x7   :  { %v25_v1 = vshrl.u32 %v24_v0, 7  ;;  %s41_s12 = sshll.u32 %s110_s11, 4  ;;  %s42_s12 = int_to_ptr.vmem [resolvable:$true] %s41_s12 }
   0x9   :  { %v28_v2 = vcvt.s32.f32 %v25_v1 }
   0xb   :  { %v31_v5 = vmul.f32 %v55_v3, %v28_v2 }
   0xd   :  { %v34_v6 = vadd.f32 %v56_v4, %v31_v5 }
   0xf   :  { %35 = vst [vmem:[#allocation5] sm:$0xff] %v34_v6 }
  0x10   :  { %46 = dma.vmem_to_hbm [thread:$0]  %s42_s12, 128, %s44_s15, [#allocation4]  }
  0x11   :  { %107 = dma.done.wait [#allocation4], 128  }
  0x12   :  { %108 = vsyncadd [#allocation4], 4294967168 }
  0x13   :  { %51 = vsyncpa [#allocation3], 1 }
  0x14   :  { %52 = vsyncpa [#allocation4], 1 }

</bundles_post_ra>
